<compile_context>
chip_gen: v6e
topology: v6e:2x2x1
jax: 0.10.0
libtpu: 0.0.40
codegen_flags: <defaults>
</compile_context>

<pallas_src>
import jax
import jax.numpy as jnp
import numpy as np
from jax.experimental import pallas as pl
from jax.experimental.pallas import tpu as pltpu


# ----------------------------- Pallas kernel -----------------------------

def feature_projection_kernel(x_ref, w_ref, b_ref, scale_ref, o_ref):
    # x_ref:     (TM, in_dim)       current row tile
    # w_ref:     (in_dim, out_dim)  grid-invariant
    # b_ref:     (1, out_dim)       grid-invariant
    # scale_ref: (1, out_dim)       grid-invariant
    # o_ref:     (TM, out_dim)
    y = jnp.dot(x_ref[...], w_ref[...], preferred_element_type=jnp.float32)
    o_ref[...] = ((y + b_ref[...]) * scale_ref[...]).astype(o_ref.dtype)


# ----------------------------- wrapper -----------------------------

def feature_projection(features, weight, bias, scale, *, block_rows=None):
    """features: (..., in_dim); weight: (in_dim, out_dim); bias, scale: (out_dim,)."""
    in_dim = features.shape[-1]
    out_dim = weight.shape[1]
    lead_shape = features.shape[:-1]
    out_dtype = features.dtype

    # Flatten all leading dims into one row axis so each grid step feeds the MXU as
    # many rows as possible.
    x = features.reshape(-1, in_dim)
    M = x.shape[0]

    # Pick a row tile: as large as reasonable (cap 512), sublane-aligned. Pad M up to a
    # multiple of the tile so every block is full (no ragged tiles, unmasked writes).
    if block_rows is None:
        block_rows = min(max(M, 8), 512)
        # round block up to a multiple of 8 (sublane) for well-formed tiles
        block_rows = ((block_rows + 7) // 8) * 8
    M_pad = ((M + block_rows - 1) // block_rows) * block_rows
    if M_pad != M:
        x = jnp.pad(x, ((0, M_pad - M), (0, 0)))

    grid = (M_pad // block_rows,)

    out = pl.pallas_call(
        feature_projection_kernel,
        grid=grid,
        in_specs=[
            pl.BlockSpec((block_rows, in_dim), lambda i: (i, 0)),   # activations: tiled rows
            pl.BlockSpec((in_dim, out_dim), lambda i: (0, 0)),      # weight: grid-invariant
            pl.BlockSpec((1, out_dim), lambda i: (0, 0)),           # bias
            pl.BlockSpec((1, out_dim), lambda i: (0, 0)),           # scale
        ],
        out_specs=pl.BlockSpec((block_rows, out_dim), lambda i: (i, 0)),
        out_shape=jax.ShapeDtypeStruct((M_pad, out_dim), out_dtype),
        compiler_params=pltpu.CompilerParams(
            dimension_semantics=("parallel",),   # independent row tiles -> megacore-shardable
        ),
    )(x, weight, bias.reshape(1, out_dim), scale.reshape(1, out_dim))

    if M_pad != M:
        out = out[:M]
    return out.reshape(*lead_shape, out_dim)


# ----------------------------- pure-JAX reference -----------------------------

def ref_feature_projection(features, weight, bias, scale):
    return scale * (features @ weight + bias)


# ----------------------------- main -----------------------------

if __name__ == "__main__":
    # Small shapes consistent with the module: (batch, seq, in_dim) -> (batch, seq, out_dim)
    B, T = 2, 8
    IN_DIM, OUT_DIM = 32, 64

    key = jax.random.PRNGKey(0)
    k_feat, k_w, k_b, k_s = jax.random.split(key, 4)

    features = jax.random.normal(k_feat, (B, T, IN_DIM), jnp.float32)
    weight = 0.02 * jax.random.normal(k_w, (IN_DIM, OUT_DIM), jnp.float32)   # torch weight.T
    bias = 0.02 * jax.random.normal(k_b, (OUT_DIM,), jnp.float32)
    scale = 1.0 + 0.1 * jax.random.normal(k_s, (OUT_DIM,), jnp.float32)      # feature_proj_scale

    out = feature_projection(features, weight, bias, scale)
    out = jax.block_until_ready(out)

    ref = ref_feature_projection(features, weight, bias, scale)
    np.testing.assert_allclose(np.asarray(out), np.asarray(ref), atol=1e-5, rtol=1e-5)

    print("KERNEL_OK")
</pallas_src>

<mosaic_0001>
module attributes {stable_mosaic.version = 11 : i64} {
  func.func @feature_projection_kernel(%arg0: i32, %arg1: memref<16x32xf32, #tpu.memory_space<vmem>>, %arg2: memref<32x64xf32, #tpu.memory_space<vmem>>, %arg3: memref<1x64xf32, #tpu.memory_space<vmem>>, %arg4: memref<1x64xf32, #tpu.memory_space<vmem>>, %arg5: memref<16x64xf32, #tpu.memory_space<vmem>>) attributes {dimension_semantics = [#tpu.dimension_semantics<parallel>], iteration_bounds = array<i64: 1>, scalar_prefetch = 0 : i64, scratch_operands = 0 : i64, tpu.core_type = #tpu.core_type<tc>, window_params = [{transform_indices = @transform_0, window_bounds = array<i64: 16, 32>}, {pipeline_mode = #tpu.pipeline_mode<synchronous>, transform_indices = @transform_1, window_bounds = array<i64: 32, 64>}, {pipeline_mode = #tpu.pipeline_mode<synchronous>, transform_indices = @transform_2, window_bounds = array<i64: 1, 64>}, {pipeline_mode = #tpu.pipeline_mode<synchronous>, transform_indices = @transform_3, window_bounds = array<i64: 1, 64>}, {transform_indices = @transform_4, window_bounds = array<i64: 16, 64>}]} {
    %c0 = arith.constant 0 : index
    %c0_0 = arith.constant 0 : index
    %0 = vector.load %arg1[%c0, %c0_0] : memref<16x32xf32, #tpu.memory_space<vmem>>, vector<16x32xf32>
    %c0_1 = arith.constant 0 : index
    %c0_2 = arith.constant 0 : index
    %1 = vector.load %arg2[%c0_1, %c0_2] : memref<32x64xf32, #tpu.memory_space<vmem>>, vector<32x64xf32>
    %cst = arith.constant dense<0.000000e+00> : vector<16x64xf32>
    %2 = tpu.matmul %0, %1, %cst {dimension_numbers = #tpu.dot_dimension_numbers<[1], [0], [0], [1], [0, 0, 1, 1], [], []>} : vector<16x32xf32>, vector<32x64xf32>, vector<16x64xf32> -> vector<16x64xf32>
    %c0_3 = arith.constant 0 : index
    %c0_4 = arith.constant 0 : index
    %3 = vector.load %arg3[%c0_3, %c0_4] : memref<1x64xf32, #tpu.memory_space<vmem>>, vector<1x64xf32>
    %4 = vector.broadcast %3 : vector<1x64xf32> to vector<16x64xf32>
    %5 = arith.addf %2, %4 : vector<16x64xf32>
    %c0_5 = arith.constant 0 : index
    %c0_6 = arith.constant 0 : index
    %6 = vector.load %arg4[%c0_5, %c0_6] : memref<1x64xf32, #tpu.memory_space<vmem>>, vector<1x64xf32>
    %7 = vector.broadcast %6 : vector<1x64xf32> to vector<16x64xf32>
    %8 = arith.mulf %5, %7 : vector<16x64xf32>
    %c0_7 = arith.constant 0 : index
    %c0_8 = arith.constant 0 : index
    %9 = vector.load %arg5[%c0_7, %c0_8] : memref<16x64xf32, #tpu.memory_space<vmem>>, vector<16x64xf32>
    tpu.vector_store %arg5[%c0_7, %c0_8], %8 {strides = array<i32>} : memref<16x64xf32, #tpu.memory_space<vmem>>, vector<16x64xf32>,
    return
  }
  func.func @transform_0(%arg0: i32) -> (i32, i32) {
    %c0_i32 = arith.constant 0 : i32
    %c0_i32_0 = arith.constant 0 : i32
    return %arg0, %c0_i32 : i32, i32
  }
  func.func @transform_1(%arg0: i32) -> (i32, i32) {
    %c0_i32 = arith.constant 0 : i32
    %c0_i32_0 = arith.constant 0 : i32
    %c0_i32_1 = arith.constant 0 : i32
    return %c0_i32, %c0_i32_0 : i32, i32
  }
  func.func @transform_2(%arg0: i32) -> (i32, i32) {
    %c0_i32 = arith.constant 0 : i32
    %c0_i32_0 = arith.constant 0 : i32
    %c0_i32_1 = arith.constant 0 : i32
    return %c0_i32, %c0_i32_0 : i32, i32
  }
  func.func @transform_3(%arg0: i32) -> (i32, i32) {
    %c0_i32 = arith.constant 0 : i32
    %c0_i32_0 = arith.constant 0 : i32
    %c0_i32_1 = arith.constant 0 : i32
    return %c0_i32, %c0_i32_0 : i32, i32
  }
  func.func @transform_4(%arg0: i32) -> (i32, i32) {
    %c0_i32 = arith.constant 0 : i32
    %c0_i32_0 = arith.constant 0 : i32
    return %arg0, %c0_i32 : i32, i32
  }
}

</mosaic_0001>

<bundles_post_ra>
// kernel: tpu_custom_call.1
= control target key start
LH: loop header
LB: loop body
LE: loop exit
PB: predicated region body
PF: predicated region fallthrough
CT: control target
= control target key end

     0   :  { %9 = vsyncpa [#allocation3], 0  ;;  %s319_s0 = inlined_call_operand.hbm [shape: f32[16,32], index: 0, kind: input, shape index: {}]   ;;  %s320_s1 = inlined_call_operand.hbm [shape: f32[32,64], index: 1, kind: input, shape index: {}]   ;;  %s321_s2 = inlined_call_operand.vmem [shape: f32[1,64], index: 2, kind: input, shape index: {}]   ;;  %s322_s3 = inlined_call_operand.vmem [shape: f32[1,64], index: 3, kind: input, shape index: {}]   ;;  %s323_s4 = inlined_call_operand.hbm [shape: f32[16,64], index: 4, kind: output, shape index: {}]  }
   0x1   :  { %10 = vsyncpa [#allocation6], 0 }
   0x2   :  { %11 = vsyncpa [#allocation4], 0  ;;  %s263_s15 = smov [#allocation2]  }
   0x3   :  { %s17_s16 = sshll.u32 %s263_s15, 4  ;;  %s18_s16 = int_to_ptr.vmem [resolvable:$true] %s17_s16 }
   0x4   :  { %s205_s17 = scalar_lea.vmem %s18_s16, 256  ;;  %p210_p1 = scmp.lt.s32.totalorder %s18_s16, %s18_s16 }
   0x5   :  { %p206_p0 = scmp.ne.s32.totalorder %s18_s16, %s205_s17  ;;  %p211_p2 = scmp.lt.s32.totalorder %s205_s17, %s205_s17 }
   0x7   :  { %p212_p3 = por %p211_p2, %p210_p1 }
   0x9   :  { %p213_p4 = pnand %p212_p3, %p206_p0 }
   0xb   :  { %216 = shalt.err (!%p213_p4)
}
   0xc   :  { %s264_s18 = smov 128   ;;  %s265_s19 = smov 8  }
   0xd   :  { %23 = dma.hbm_to_vmem [thread:$0]  %s319_s0, 256, %s18_s16, [#allocation3], %s264_s18, %s264_s18, %s265_s19  }
   0xe   :  { %s266_s22 = smov [#allocation5]  }
   0xf   :  { %s29_s23 = sshll.u32 %s266_s22, 4  ;;  %s30_s23 = int_to_ptr.vmem [resolvable:$true] %s29_s23 }
  0x10   :  { %s225_s24 = scalar_lea.vmem %s30_s23, 512  ;;  %p230_p6 = scmp.lt.s32.totalorder %s30_s23, %s30_s23 }
  0x11   :  { %p226_p5 = scmp.ne.s32.totalorder %s30_s23, %s225_s24  ;;  %p231_p7 = scmp.lt.s32.totalorder %s225_s24, %s225_s24 }
  0x13   :  { %p232_p8 = por %p231_p7, %p230_p6 }
  0x15   :  { %p233_p9 = pnand %p232_p8, %p226_p5 }
  0x17   :  { %236 = shalt.err (!%p233_p9)
}
  0x18   :  { %35 = dma.hbm_to_vmem [thread:$0]  %s320_s1, 512, %s30_s23, [#allocation6], %s264_s18, %s264_s18, %s265_s19  }
  0x19   :  { %257 = dma.done.wait [#allocation3], 256  }
  0x1a   :  { %258 = vsyncadd [#allocation3], 4294967040 }
  0x1b   :  { %259 = dma.done.wait [#allocation6], 512  }
  0x1c   :  { %260 = vsyncadd [#allocation6], 4294966784  ;;  %vm59_vm0 = vcmask 261120   ;;  %v51_v0 = vld [vmem:[#allocation5 + $0x18] sm:$0xff]  ;;  %v50_v1 = vld [vmem:[#allocation5 + $0x10] sm:$0xff]  ;;  %vm150_vm1 = vcmask 523264  }
  0x1d   :  { %181 = vmatprep.subr.mxu0 %v51_v0  ;;  %v46_v2 = vld [vmem:[#allocation2] sm:$0xff]  ;;  %v49_v3 = vld [vmem:[#allocation5 + $0x8] sm:$0xff]  ;;  %v48_v4 = vld [vmem:[#allocation5] sm:$0xff]  ;;  %s267_s29 = smov [#allocation7]  }
  0x1e   :  { %182 = vmatpush3.msra.mxu0 %v51_v0  ;;  %189 = vmatprep.mubr.msk.f32.mxu0 %vm59_vm0, %v46_v2  ;;  %v47_v5 = vld [vmem:[#allocation2 + $0x8] sm:$0xff]  ;;  %v171_v6 = vld [vmem:[%s321_s2] ss:$0 sm:$0xff]  ;;  %s158_s30 = sshll.u32 %s267_s29, 4  ;;  %s159_s30 = int_to_ptr.vmem [resolvable:$true] %s158_s30 }
  0x1f   :  { %183 = vmatprep.subr.mxu0 %v50_v1  ;;  %v174_v8 = vld [vmem:[%s322_s3] ss:$0 sm:$0xff]  ;;  %s237_s5 = scalar_lea.vmem %s159_s30, 256  ;;  %p242_p11 = scmp.lt.s32.totalorder %s159_s30, %s159_s30 }
  0x20   :  { %184 = vmatpush3.msra.mxu0 %v50_v1  ;;  %p238_p10 = scmp.ne.s32.totalorder %s159_s30, %s237_s5  ;;  %p243_p12 = scmp.lt.s32.totalorder %s237_s5, %s237_s5 }
  0x21   :  { %185 = vmatprep.subr.mxu0 %v49_v3 }
  0x22   :  { %186 = vmatpush3.msra.mxu0 %v49_v3  ;;  %p244_p13 = por %p243_p12, %p242_p11 }
  0x23   :  { %187 = vmatprep.subr.mxu0 %v48_v4 }
  0x24   :  { %188 = vmatpush3.msra.mxu0 %v48_v4  ;;  %p245_p0 = pnand %p244_p13, %p238_p10 }
  0x25   :  { %190 = vmatmul.mubr.msk.f32.vlgmr.msra.gmra.mxu0 %vm59_vm0, %v47_v5 }
  0xe5   :  { %v191_v7 = vpop.f32.mrf.mxu0 }
  0xe6   :  { %v138_v9 = vadd.f32 %v191_v7, %v171_v6 }
  0xe7   :  { %v132_v10 = vpop.f32.mrf.mxu0 }
  0xe8   :  { %v149_v11 = vmul.f32 %v174_v8, %v138_v9  ;;  %v133_v12 = vadd.f32 %v171_v6, %v132_v10 }
  0xea   :  { %v148_v13 = vmul.f32 %v174_v8, %v133_v12  ;;  %152 = vst.msk [vmem:[#allocation7 + $0x8] sm:$0xff] %vm150_vm1, %v149_v11 }
  0xec   :  { %151 = vst.msk [vmem:[#allocation7] sm:$0xff] %vm150_vm1, %v148_v13 }
  0xed   :  { %248 = shalt.err (!%p245_p0)
}
  0xee   :  { %164 = dma.vmem_to_hbm [thread:$0]  %s159_s30, 256, %s323_s4, [#allocation4], %s264_s18, %s264_s18, %s265_s19  }
  0xef   :  { %261 = dma.done.wait [#allocation4], 256  }
  0xf0   :  { %262 = vsyncadd [#allocation4], 4294967040 }
  0xf1   :  { %168 = vsyncpa [#allocation3], 1 }
  0xf2   :  { %169 = vsyncpa [#allocation6], 1 }
  0xf3   :  { %170 = vsyncpa [#allocation4], 1 }

</bundles_post_ra>
